<compile_context>
chip_gen: v7x
topology: tpu7x:2x2x1
jax: 0.10.0
libtpu: 0.0.40
codegen_flags: <defaults>
</compile_context>

<pallas_src>
import jax
import jax.numpy as jnp
from jax.experimental import pallas as pl
from jax.experimental.pallas import tpu as pltpu

EPS = 1e-5


# --------------------------------------------------------------------------
# Fast path: single fused pass, channel-tiled
# --------------------------------------------------------------------------
def _bn_fused_kernel(x_ref, w_ref, b_ref, o_ref):
    # x_ref: (N, Ct, HW) native dtype; w_ref/b_ref: (Ct, 1) masked affine (f32).
    x = x_ref[...]
    n, ct, hw = x.shape
    inv_cnt = 1.0 / float(n * hw)

    xf = x.astype(jnp.float32)
    s1 = jnp.sum(xf, axis=(0, 2), keepdims=True)           # (1, Ct, 1)
    s2 = jnp.sum(xf * xf, axis=(0, 2), keepdims=True)      # fused sum/sumsq
    mean = s1 * inv_cnt
    var = jnp.maximum(s2 * inv_cnt - mean * mean, 0.0)     # guard cancellation
    inv_std = jax.lax.rsqrt(var + EPS)                     # EUP

    w = w_ref[...].reshape(1, ct, 1)
    b = b_ref[...].reshape(1, ct, 1)
    scale = inv_std * w                                    # fold per-channel scale
    shift = b - mean * scale                               # fold mean into bias
    o_ref[...] = (xf * scale + shift).astype(o_ref.dtype)


# --------------------------------------------------------------------------
# Fallback path: two passes, HW-tiled (for activations too big for VMEM)
# --------------------------------------------------------------------------
def _make_stats_kernel(hw_total, hw_tile):
    ragged = (hw_total % hw_tile) != 0

    def kernel(x_ref, sum_ref, sq_ref):
        h = pl.program_id(1)

        @pl.when(h == 0)
        def _():
            sum_ref[...] = jnp.zeros_like(sum_ref)
            sq_ref[...] = jnp.zeros_like(sq_ref)

        x = x_ref[...].astype(jnp.float32)                 # (N, Ct, HWt)
        n, ct, hwt = x.shape
        if ragged:
            pos = h * hwt + jax.lax.broadcasted_iota(jnp.int32, (1, 1, hwt), 2)
            x = jnp.where(pos < hw_total, x, 0.0)          # mask ragged HW tail
        xs = jnp.sum(x, axis=0)                            # (Ct, HWt)
        sum_ref[...] += jnp.sum(xs, axis=1, keepdims=True)
        sq_ref[...] += jnp.sum(jnp.sum(x * x, axis=0), axis=1, keepdims=True)

    return kernel


def _norm_kernel(x_ref, scale_ref, shift_ref, o_ref):
    x = x_ref[...].astype(jnp.float32)                     # (N, Ct, HWt)
    ct = x.shape[1]
    scale = scale_ref[...].reshape(1, ct, 1)
    shift = shift_ref[...].reshape(1, ct, 1)
    o_ref[...] = (x * scale + shift).astype(o_ref.dtype)


# --------------------------------------------------------------------------
# Tiling heuristics
# --------------------------------------------------------------------------
def _vmem_budgets():
    """(tile-sizing budget, compiler vmem_limit_bytes), per chip."""
    try:
        cap = int(pltpu.get_tpu_info().vmem_capacity_bytes)
    except Exception:
        cap = 64 * 1024 * 1024                # conservative (v7x per-TC) fallback
    # ~2/3 of capacity minus fixed headroom for params/semaphores/compiler
    # scratch (~40 MiB on v7x's 64 MiB, ~81 MiB on v5e/v6e's 128 MiB).
    budget = max(8 << 20, cap * 2 // 3 - (4 << 20))
    limit = min(cap, budget + (8 << 20))
    return budget, limit


def _sublane_align(itemsize):
    # c_tile is the second-minor (sublane) dim; sub-32-bit dtypes pack 16/32
    # rows per vreg.
    return {1: 32, 2: 16}.get(itemsize, 8)


def _choose_c_tile(N, C, HW, itemsize, budget_bytes):
    """Largest aligned channel tile that fits the VMEM budget while leaving
    >=4 grid steps (DMA/compute overlap + v7x megacore).  Returns 0 when even
    the minimum tile does not fit -> caller uses the two-pass fallback."""
    align = _sublane_align(itemsize)
    # 2x(in) + 2x(out) double-buffers at native dtype + ~one f32 tile of slack
    # for whatever Mosaic materializes during the fused reduce/normalize.
    per_channel = N * HW * (4 * itemsize + 4)
    if C <= 4 * align and C * per_channel <= budget_bytes:
        return C                              # tiny C: one full-extent block
    max_tile = (budget_bytes // per_channel // align) * align
    if max_tile < align:
        return 0                              # -> two-pass HW-tiled fallback
    cap = ((pl.cdiv(C, 4) + align - 1) // align) * align   # >=4 grid steps
    tile = min(max_tile, cap)
    return C if tile >= C else tile


# --------------------------------------------------------------------------
# Wrappers
# --------------------------------------------------------------------------
def _bn_two_pass(x3, w2, b2, budget, vmem_limit):
    N, C, HW = x3.shape
    itemsize = jnp.dtype(x3.dtype).itemsize
    align = _sublane_align(itemsize)
    c_tile = C if C < align else align
    per_elem = 4 * itemsize + 4
    hw_tile = (budget // (N * c_tile * per_elem) // 128) * 128
    if hw_tile < 128:
        hw_tile = 128   # TODO(synk): also tile over N for extreme batch sizes
    if hw_tile >= HW:
        hw_tile = HW

    grid = (pl.cdiv(C, c_tile), pl.cdiv(HW, hw_tile))

    # Pass 1: per-channel sum / sum-of-squares (HW axis is the reduction).
    s1, s2 = pl.pallas_call(
        _make_stats_kernel(HW, hw_tile),
        out_shape=(jax.ShapeDtypeStruct((C, 1), jnp.float32),
                   jax.ShapeDtypeStruct((C, 1), jnp.float32)),
        grid=grid,
        in_specs=[pl.BlockSpec((N, c_tile, hw_tile), lambda c, h: (0, c, h))],
        out_specs=(pl.BlockSpec((c_tile, 1), lambda c, h: (c, 0)),
                   pl.BlockSpec((c_tile, 1), lambda c, h: (c, 0))),
        compiler_params=pltpu.CompilerParams(
            dimension_semantics=("parallel", "arbitrary"),
            vmem_limit_bytes=vmem_limit,
        ),
    )(x3)

    # Fold per-channel scale/shift in plain JAX (C-sized, negligible).
    cnt = float(N * HW)
    mean = s1[:, 0] / cnt
    var = jnp.maximum(s2[:, 0] / cnt - mean * mean, 0.0)
    inv_std = jax.lax.rsqrt(var + EPS)
    scale = (inv_std * w2[:, 0]).reshape(C, 1)
    shift = (b2[:, 0] - mean * inv_std * w2[:, 0]).reshape(C, 1)

    # Pass 2: elementwise normalize.
    return pl.pallas_call(
        _norm_kernel,
        out_shape=jax.ShapeDtypeStruct((N, C, HW), x3.dtype),
        grid=grid,
        in_specs=[
            pl.BlockSpec((N, c_tile, hw_tile), lambda c, h: (0, c, h)),
            pl.BlockSpec((c_tile, 1), lambda c, h: (c, 0)),
            pl.BlockSpec((c_tile, 1), lambda c, h: (c, 0)),
        ],
        out_specs=pl.BlockSpec((N, c_tile, hw_tile), lambda c, h: (0, c, h)),
        compiler_params=pltpu.CompilerParams(
            dimension_semantics=("parallel", "parallel"),
            vmem_limit_bytes=vmem_limit,
        ),
    )(x3, scale, shift)


def bn_wrapper_forward(x_nchw, weight, bias, weight_mask, bias_mask,
                       *, vmem_budget_override=None):
    """Equivalent of BNWrapper.forward(x). x_nchw: [N, C, H, W], any float dtype."""
    # Parameter masking (the in-place weight.data.mul_(mask)) — tiny, plain JAX.
    w2 = (weight * weight_mask).astype(jnp.float32).reshape(-1, 1)
    b2 = (bias * bias_mask).astype(jnp.float32).reshape(-1, 1)

    N, C, H, W = x_nchw.shape
    HW = H * W
    x3 = x_nchw.reshape(N, C, HW)          # free reshape, no transpose

    budget, vmem_limit = _vmem_budgets()
    if vmem_budget_override is not None:   # test hook for the fallback path
        budget = int(vmem_budget_override)

    itemsize = jnp.dtype(x_nchw.dtype).itemsize
    c_tile = _choose_c_tile(N, C, HW, itemsize, budget)

    if c_tile == 0:
        out = _bn_two_pass(x3, w2, b2, budget, vmem_limit)
    else:
        out = pl.pallas_call(
            _bn_fused_kernel,
            out_shape=jax.ShapeDtypeStruct((N, C, HW), x_nchw.dtype),
            grid=(pl.cdiv(C, c_tile),),
            in_specs=[
                pl.BlockSpec((N, c_tile, HW), lambda c: (0, c, 0)),
                pl.BlockSpec((c_tile, 1), lambda c: (c, 0)),
                pl.BlockSpec((c_tile, 1), lambda c: (c, 0)),
            ],
            out_specs=pl.BlockSpec((N, c_tile, HW), lambda c: (0, c, 0)),
            compiler_params=pltpu.CompilerParams(
                dimension_semantics=("parallel",),
                vmem_limit_bytes=vmem_limit,
            ),
        )(x3, w2, b2)

    return out.reshape(N, C, H, W)         # free reshape, no transpose


# --------------------------------------------------------------------------
if __name__ == "__main__":
    key = jax.random.PRNGKey(0)
    kx, kw, kb, kx2 = jax.random.split(key, 4)

    N, C, H, W = 2, 4, 16, 16
    x = jax.random.normal(kx, (N, C, H, W), dtype=jnp.float32)

    # Deterministic synthetic BatchNorm2d affine params (shape [C]).
    weight = 1.0 + 0.1 * jax.random.normal(kw, (C,), dtype=jnp.float32)
    bias = 0.1 * jax.random.normal(kb, (C,), dtype=jnp.float32)

    # BNWrapper.update_mask(prune_idx): zero out pruned channels.
    prune_idx = jnp.array([1])
    weight_mask = jnp.ones((C,), jnp.float32).at[prune_idx].set(0.0)
    bias_mask = jnp.ones((C,), jnp.float32).at[prune_idx].set(0.0)

    def ref_bn(xr, w, b, wm, bm):
        w_m = w * wm
        b_m = b * bm
        mean = jnp.mean(xr, axis=(0, 2, 3), keepdims=True)
        var = jnp.mean((xr - mean) ** 2, axis=(0, 2, 3), keepdims=True)
        return ((xr - mean) * jax.lax.rsqrt(var + EPS)
                * w_m.reshape(1, -1, 1, 1) + b_m.reshape(1, -1, 1, 1))

    # --- Test 1: fast single-pass channel-tiled path ------------------------
    y = jax.block_until_ready(
        bn_wrapper_forward(x, weight, bias, weight_mask, bias_mask))
    r = ref_bn(x, weight, bias, weight_mask, bias_mask)
    assert jnp.max(jnp.abs(y - r)) < 1e-4
    assert bool(jnp.all(y[:, 1] == 0.0))   # pruned channel fully zeroed

    # --- Test 2: two-pass HW-tiled fallback (forced via tiny tiling budget),
    #             HW=144 exercises the ragged-HW-tile masking path ------------
    H2, W2 = 12, 12
    x2 = jax.random.normal(kx2, (N, C, H2, W2), dtype=jnp.float32)
    y2 = jax.block_until_ready(
        bn_wrapper_forward(x2, weight, bias, weight_mask, bias_mask,
                           vmem_budget_override=16 * 1024))
    r2 = ref_bn(x2, weight, bias, weight_mask, bias_mask)
    assert jnp.max(jnp.abs(y2 - r2)) < 1e-4
    assert bool(jnp.all(y2[:, 1] == 0.0))

    print("KERNEL_OK")
</pallas_src>

<mosaic_0001>
module attributes {stable_mosaic.version = 11 : i64} {
  func.func @_bn_fused_kernel(%arg0: i32, %arg1: memref<2x4x256xf32, #tpu.memory_space<vmem>>, %arg2: memref<4x1xf32, #tpu.memory_space<vmem>>, %arg3: memref<4x1xf32, #tpu.memory_space<vmem>>, %arg4: memref<2x4x256xf32, #tpu.memory_space<vmem>>) attributes {dimension_semantics = [#tpu.dimension_semantics<parallel>], iteration_bounds = array<i64: 1>, scalar_prefetch = 0 : i64, scratch_operands = 0 : i64, tpu.core_type = #tpu.core_type<tc>, window_params = [{transform_indices = @transform_0, window_bounds = array<i64: 2, 4, 256>}, {transform_indices = @transform_1, window_bounds = array<i64: 4, 1>}, {transform_indices = @transform_2, window_bounds = array<i64: 4, 1>}, {transform_indices = @transform_3, window_bounds = array<i64: 2, 4, 256>}]} {
    %c0 = arith.constant 0 : index
    %c0_0 = arith.constant 0 : index
    %c0_1 = arith.constant 0 : index
    %0 = vector.load %arg1[%c0, %c0_0, %c0_1] : memref<2x4x256xf32, #tpu.memory_space<vmem>>, vector<2x4x256xf32>
    %cst = arith.constant dense<0.000000e+00> : vector<4xf32>
    %1 = vector.multi_reduction <add>, %0, %cst [0, 2] : vector<2x4x256xf32> to vector<4xf32>
    %2 = vector.shape_cast %1 : vector<4xf32> to vector<1x4x1xf32>
    %3 = arith.mulf %0, %0 : vector<2x4x256xf32>
    %cst_2 = arith.constant dense<0.000000e+00> : vector<4xf32>
    %4 = vector.multi_reduction <add>, %3, %cst_2 [0, 2] : vector<2x4x256xf32> to vector<4xf32>
    %5 = vector.shape_cast %4 : vector<4xf32> to vector<1x4x1xf32>
    %cst_3 = arith.constant 0.001953125 : f32
    %6 = vector.broadcast %cst_3 : f32 to vector<1x4x1xf32>
    %7 = arith.mulf %2, %6 : vector<1x4x1xf32>
    %cst_4 = arith.constant 0.001953125 : f32
    %8 = vector.broadcast %cst_4 : f32 to vector<1x4x1xf32>
    %9 = arith.mulf %5, %8 : vector<1x4x1xf32>
    %10 = arith.mulf %7, %7 : vector<1x4x1xf32>
    %11 = arith.subf %9, %10 : vector<1x4x1xf32>
    %cst_5 = arith.constant 0.000000e+00 : f32
    %12 = vector.broadcast %cst_5 : f32 to vector<1x4x1xf32>
    %13 = arith.maximumf %11, %12 : vector<1x4x1xf32>
    %cst_6 = arith.constant 9.99999974E-6 : f32
    %14 = vector.broadcast %cst_6 : f32 to vector<1x4x1xf32>
    %15 = arith.addf %13, %14 : vector<1x4x1xf32>
    %16 = math.rsqrt %15 : vector<1x4x1xf32>
    %c0_7 = arith.constant 0 : index
    %c0_8 = arith.constant 0 : index
    %17 = vector.load %arg2[%c0_7, %c0_8] : memref<4x1xf32, #tpu.memory_space<vmem>>, vector<4x1xf32>
    %18 = vector.shape_cast %17 : vector<4x1xf32> to vector<1x4x1xf32>
    %c0_9 = arith.constant 0 : index
    %c0_10 = arith.constant 0 : index
    %19 = vector.load %arg3[%c0_9, %c0_10] : memref<4x1xf32, #tpu.memory_space<vmem>>, vector<4x1xf32>
    %20 = vector.shape_cast %19 : vector<4x1xf32> to vector<1x4x1xf32>
    %21 = arith.mulf %16, %18 : vector<1x4x1xf32>
    %22 = arith.mulf %7, %21 : vector<1x4x1xf32>
    %23 = arith.subf %20, %22 : vector<1x4x1xf32>
    %24 = vector.broadcast %21 : vector<1x4x1xf32> to vector<2x4x256xf32>
    %25 = arith.mulf %0, %24 : vector<2x4x256xf32>
    %26 = vector.broadcast %23 : vector<1x4x1xf32> to vector<2x4x256xf32>
    %27 = arith.addf %25, %26 : vector<2x4x256xf32>
    %c0_11 = arith.constant 0 : index
    %c0_12 = arith.constant 0 : index
    %c0_13 = arith.constant 0 : index
    %28 = vector.load %arg4[%c0_11, %c0_12, %c0_13] : memref<2x4x256xf32, #tpu.memory_space<vmem>>, vector<2x4x256xf32>
    tpu.vector_store %arg4[%c0_11, %c0_12, %c0_13], %27 {strides = array<i32>} : memref<2x4x256xf32, #tpu.memory_space<vmem>>, vector<2x4x256xf32>,
    return
  }
  func.func @transform_0(%arg0: i32) -> (i32, i32, i32) {
    %c0_i32 = arith.constant 0 : i32
    %c0_i32_0 = arith.constant 0 : i32
    %c0_i32_1 = arith.constant 0 : i32
    return %c0_i32, %arg0, %c0_i32_0 : i32, i32, i32
  }
  func.func @transform_1(%arg0: i32) -> (i32, i32) {
    %c0_i32 = arith.constant 0 : i32
    %c0_i32_0 = arith.constant 0 : i32
    return %arg0, %c0_i32 : i32, i32
  }
  func.func @transform_2(%arg0: i32) -> (i32, i32) {
    %c0_i32 = arith.constant 0 : i32
    %c0_i32_0 = arith.constant 0 : i32
    return %arg0, %c0_i32 : i32, i32
  }
  func.func @transform_3(%arg0: i32) -> (i32, i32, i32) {
    %c0_i32 = arith.constant 0 : i32
    %c0_i32_0 = arith.constant 0 : i32
    %c0_i32_1 = arith.constant 0 : i32
    return %c0_i32, %arg0, %c0_i32_0 : i32, i32, i32
  }
}

</mosaic_0001>

<bundles_post_ra>
// kernel: tpu_custom_call.1
= control target key start
LH: loop header
LB: loop body
LE: loop exit
PB: predicated region body
PF: predicated region fallthrough
CT: control target
= control target key end

     0   :  { %8 = vsyncpa [#allocation3], 0  ;;  %s253_s0 = inlined_call_operand.hbm [shape: f32[2,4,256], index: 0, kind: input, shape index: {}]   ;;  %s254_s1 = inlined_call_operand.vmem [shape: f32[4,1], index: 1, kind: input, shape index: {}]   ;;  %s255_s2 = inlined_call_operand.vmem [shape: f32[4,1], index: 2, kind: input, shape index: {}]   ;;  %s256_s3 = inlined_call_operand.hbm [shape: f32[2,4,256], index: 3, kind: output, shape index: {}]  }
   0x1   :  { %9 = vsyncpa [#allocation4], 0  ;;  %s183_s12 = smov [#allocation2]   ;;  %s135_s16 = scalar_lea.hbm %s253_s0, 256 }
   0x2   :  { %s15_s13 = sshll.u32 %s183_s12, 4  ;;  %p136_p0 = scmp.ne.s32.totalorder %s253_s0, %s135_s16  ;;  %s16_s13 = int_to_ptr.vmem [resolvable:$true] %s15_s13 }
   0x3   :  { %p139_p1 = scmp.lt.u32.totalorder %s135_s16, %s253_s0 }
   0x5   :  { %p141_p2 = pnand %p139_p1, %p136_p0 }
   0x7   :  { %144 = shalt.err (!%p141_p2)
}
   0x8   :  { %s145_s21 = scalar_lea.vmem %s16_s13, 256  ;;  %p150_p4 = scmp.lt.s32.totalorder %s16_s13, %s16_s13 }
   0x9   :  { %p146_p3 = scmp.ne.s32.totalorder %s16_s13, %s145_s21  ;;  %p151_p5 = scmp.lt.s32.totalorder %s145_s21, %s145_s21 }
   0xb   :  { %p152_p6 = por %p151_p5, %p150_p4 }
   0xd   :  { %p153_p7 = pnand %p152_p6, %p146_p3 }
   0xf   :  { %156 = shalt.err (!%p153_p7)
}
  0x10   :  { %s184_s22 = smov 128   ;;  %s185_s23 = smov 8  }
  0x11   :  { %21 = dma.hbm_to_vmem [thread:$0]  %s253_s0, 256, %s16_s13, [#allocation3], %s184_s22, %s184_s22, %s185_s23  }
  0x12   :  { %179 = dma.done.wait [#allocation3], 256  }
  0x13   :  { %180 = vsyncadd [#allocation3], 4294967040  ;;  %vm37_vm0 = vcmask 1043456   ;;  %v29_v0 = vld [vmem:[#allocation2] sm:$0xff]  ;;  %v30_v1 = vld [vmem:[#allocation2 + $0x8] sm:$0xff]  ;;  %v186_v22 = vmov 0   ;;  %v83_v39 = vlaneseq }
  0x14   :  { %v33_v2 = vcombine.high %v29_v0, %v29_v0  ;;  %v34_v3 = vcombine.high %v30_v1, %v30_v1  ;;  %v38_v4 = vsel %vm37_vm0, %v29_v0, 0.0  ;;  %v47_v5 = vmul.f32 %v29_v0, %v29_v0  ;;  %129 = vset.pattern.permute.xlu1 %v186_v22  ;;  %130 = vset.pattern.permute.xlu0 %v186_v22  ;;  %v71_v31 = vld [vmem:[%s254_s1] sm:$0xf]  ;;  %s188_s1 = smov [#allocation5]  }
  0x15   :  { %v48_v6 = vmul.f32 %v30_v1, %v30_v1  ;;  %v41_v8 = vsel %vm37_vm0, %v30_v1, 0.0  ;;  %v72_v34 = vld [vmem:[%s255_s2] sm:$0xf]  ;;  %v187_v37 = vmov 839922192   ;;  %v84_v41 = vshrl.u32 %v83_v39, 7 }
  0x16   :  { %v39_v7 = vsel %vm37_vm0, %v33_v2, 0.0  ;;  %v51_v10 = vcombine.high %v47_v5, %v47_v5  ;;  %v55_v12 = vsel %vm37_vm0, %v47_v5, 0.0  ;;  %v43_v13 = vsel %vm37_vm0, %v34_v3, 0.0  ;;  %s111_s29 = sshll.u32 %s188_s1, 4  ;;  %s112_s29 = int_to_ptr.vmem [resolvable:$true] %s111_s29 }
  0x17   :  { %v40_v9 = vadd.f32 %v39_v7, %v38_v4  ;;  %v52_v11 = vcombine.high %v48_v6, %v48_v6  ;;  %v58_v16 = vsel %vm37_vm0, %v48_v6, 0.0  ;;  %v81_v38 = vunpack.c.l.s4 %v187_v37  ;;  %s157_s2 = scalar_lea.vmem %s112_s29, 256  ;;  %p162_p9 = scmp.lt.s32.totalorder %s112_s29, %s112_s29 }
  0x18   :  { %v56_v15 = vsel %vm37_vm0, %v51_v10, 0.0  ;;  %p158_p8 = scmp.ne.s32.totalorder %s112_s29, %s157_s2  ;;  %p163_p10 = scmp.lt.s32.totalorder %s157_s2, %s157_s2 }
  0x19   :  { %v42_v14 = vadd.f32 %v41_v8, %v40_v9  ;;  %v57_v17 = vadd.f32 %v56_v15, %v55_v12  ;;  %v60_v19 = vsel %vm37_vm0, %v52_v11, 0.0  ;;  %v82_v40 = vunpack.c.0.s8 %v81_v38 }
  0x1a   :  { %p164_p11 = por %p163_p10, %p162_p9 }
  0x1b   :  { %v44_v18 = vadd.f32 %v43_v13, %v42_v14  ;;  %v59_v20 = vadd.f32 %v58_v16, %v57_v17  ;;  %v85_v42 = vsub.s32 %v82_v40, %v84_v41 }
  0x1c   :  { %p165_p12 = pnand %p164_p11, %p158_p8 }
  0x1d   :  { %45 = vadd.xlane.f32.xlu0 %v44_v18  ;;  %v61_v21 = vadd.f32 %v60_v19, %v59_v20 }
  0x21   :  { %62 = vadd.xlane.f32.xlu0 %v61_v21 }
  0xaa   :  { %v46_v23 = vpop.xlane.xlu0 %45 }
  0xab   :  { %v64_v24 = vmul.f32 0.001953125, %v46_v23 }
  0xad   :  { %v66_v26 = vmul.f32 %v64_v24, %v64_v24 }
  0xae   :  { %v63_v25 = vpop.xlane.xlu0 %62 }
  0xaf   :  { %v65_v27 = vmul.f32 0.001953125, %v63_v25 }
  0xb1   :  { %v67_v28 = vsub.f32 %v65_v27, %v66_v26 }
  0xb3   :  { %v68_v29 = vmax.f32 %v67_v28, 0.0 }
  0xb5   :  { %v69_v30 = vadd.f32 1e-05, %v68_v29 }
  0xb7   :  { %133 = vrsqrt.f32 %v69_v30 }
  0xc1   :  { %v134_v32 = vpop.eup %133 }
  0xc2   :  { %v73_v33 = vmul.f32 %v134_v32, %v71_v31 }
  0xc4   :  { %78 = vperm.xlu1 %129, %v73_v33   ;;  %v74_v35 = vmul.f32 %v73_v33, %v64_v24 }
  0xc6   :  { %v75_v36 = vsub.f32 %v72_v34, %v74_v35 }
  0xc8   :  { %92 = vperm.xlu1 %129, %v75_v36  }
 0x143   :  { %v79_v43 = vpop.permute.xlu1 %78 }
 0x144   :  { %v86_v44 = vrot.slane %v79_v43, %v85_v42 }
 0x146   :  { %v88_v46 = vmul.f32 %v86_v44, %v29_v0  ;;  %v89_v47 = vmul.f32 %v86_v44, %v30_v1 }
 0x147   :  { %v93_v45 = vpop.permute.xlu1 %92 }
 0x148   :  { %v100_v48 = vrot.slane %v93_v45, %v85_v42 }
 0x14a   :  { %v102_v49 = vadd.f32 %v100_v48, %v88_v46  ;;  %v103_v50 = vadd.f32 %v100_v48, %v89_v47 }
 0x14c   :  { %104 = vst [vmem:[#allocation5] sm:$0xff] %v102_v49  ;;  %105 = vst [vmem:[#allocation5 + $0x8] sm:$0xff] %v103_v50 }
 0x14d   :  { %168 = shalt.err (!%p165_p12)
}
 0x14e   :  { %s169_s5 = scalar_lea.hbm %s256_s3, 256 }
 0x14f   :  { %p170_p13 = scmp.ne.s32.totalorder %s256_s3, %s169_s5  ;;  %p173_p0 = scmp.lt.u32.totalorder %s169_s5, %s256_s3 }
 0x151   :  { %p175_p1 = pnand %p173_p0, %p170_p13 }
 0x153   :  { %178 = shalt.err (!%p175_p1)
}
 0x154   :  { %117 = dma.vmem_to_hbm [thread:$0]  %s112_s29, 256, %s256_s3, [#allocation4], %s184_s22, %s184_s22, %s185_s23  }
 0x155   :  { %181 = dma.done.wait [#allocation4], 256  }
 0x156   :  { %182 = vsyncadd [#allocation4], 4294967040 }
 0x157   :  { %121 = vsyncpa [#allocation3], 1 }
 0x158   :  { %122 = vsyncpa [#allocation4], 1 }

</bundles_post_ra>
